<compile_context>
chip_gen: v6e
topology: v6e:2x2x1
jax: 0.10.0
libtpu: 0.0.40
codegen_flags: <defaults>
</compile_context>

<pallas_src>
import jax
import jax.numpy as jnp
from jax.experimental import pallas as pl
from jax.experimental.pallas import tpu as pltpu


NO_GRID_MAX = 1024                    # batches up to this: single VMEM-resident call
VMEM_LIMIT_BYTES = 32 * 1024 * 1024   # safe on v5e/v6e (128 MiB) and v7x (64 MiB)


def _tm_max():
    """Max batch tile for the gridded path: 1024 on v7x (3.2 TB/s HBM), else 512."""
    try:
        kind = jax.devices()[0].device_kind.lower()
        if "v7" in kind:
            return 1024
    except Exception:  # pragma: no cover - conservative fallback
        pass
    return 512


def _choose_batch_tile(n, tm_max):
    """Adaptive tile: >= 2 tiles (megacore split), padding waste < 8 rows."""
    n_tiles = max(2, -(-n // tm_max))   # ceil-div, at least 2 tiles
    tm = -(-n // n_tiles)               # ceil split across tiles
    tm = -(-tm // 8) * 8                # sublane (8-row) alignment for BlockSpec
    n_tiles = -(-n // tm)
    return tm, n_tiles


def _cost_estimate(n, nz, att_size, ngh_p, res):
    flops = 2 * n * ((nz + att_size) * ngh_p + ngh_p * res)
    bytes_accessed = (
        n * (nz + att_size) * 4          # noise + att
        + (nz + att_size) * ngh_p * 4    # w1 halves (f32)
        + ngh_p * 4                      # b1
        + ngh_p * res * 2                # w2 (bf16)
        + res * 4                        # b2
        + n * res * 4                    # h (f32 output, dominant term)
    )
    return pl.CostEstimate(flops=flops, transcendentals=0,
                           bytes_accessed=bytes_accessed)


def mlp_g_kernel(noise_ref, att_ref, w1n_ref, w1a_ref, b1_ref, w2_ref, b2_ref,
                 h_ref):
    # fc1: h1 = noise @ W1n + att @ W1a + b1   (torch.cat folded into weights).
    h1 = (
        jnp.dot(noise_ref[...], w1n_ref[...], preferred_element_type=jnp.float32)
        + jnp.dot(att_ref[...], w1a_ref[...], preferred_element_type=jnp.float32)
        + b1_ref[...]
    )
    # LeakyReLU(0.2) in f32 (keep elementwise math f32 for v5e).
    h1 = jnp.where(h1 > 0.0, h1, 0.2 * h1)
    # fc2: bf16 operands on the MXU, f32 accumulation, f32 bias + ReLU.
    h2 = (
        jnp.dot(h1.astype(w2_ref.dtype), w2_ref[...],
                preferred_element_type=jnp.float32)
        + b2_ref[...]
    )
    h_ref[...] = jnp.maximum(h2, 0.0).astype(h_ref.dtype)


def init_params(key, att_size, nz, ngh, res_size):
    """weights_init: Linear weights ~ N(0, 0.02), biases = 0.

    Weights are stored as (in_features, out_features) == PyTorch W.T so the
    kernel computes y = x @ W + b.
    """
    k1, k2 = jax.random.split(key)
    w1 = 0.02 * jax.random.normal(k1, (att_size + nz, ngh), dtype=jnp.float32)
    b1 = jnp.zeros((1, ngh), dtype=jnp.float32)
    w2 = 0.02 * jax.random.normal(k2, (ngh, res_size), dtype=jnp.float32)
    b2 = jnp.zeros((1, res_size), dtype=jnp.float32)
    return w1, b1, w2, b2


def prepare_params(params, nz, lane=128):
    """One-time weight prep (outside the hot path).

    * splits w1 into noise / att halves (kills the per-call concat)
    * zero-pads ngh to exactly the next multiple of 128 (lane-dense h1)
    * casts w2 (dominant weight traffic) to bf16
    """
    w1, b1, w2, b2 = params
    ngh = w1.shape[1]
    ngh_p = max(lane, ((ngh + lane - 1) // lane) * lane)
    pad = ngh_p - ngh
    if pad:
        w1 = jnp.pad(w1, ((0, 0), (0, pad)))
        b1 = jnp.pad(b1, ((0, 0), (0, pad)))
        w2 = jnp.pad(w2, ((0, pad), (0, 0)))
    w1_noise = w1[:nz]
    w1_att = w1[nz:]
    return w1_noise, w1_att, b1, w2.astype(jnp.bfloat16), b2


@jax.jit
def mlp_g_forward(noise, att, prepared):
    """Pallas implementation of MLP_G.forward. Returns (g, h)."""
    w1n, w1a, b1, w2, b2 = prepared
    n, nz = noise.shape
    att_size = att.shape[1]
    ngh_p = w1n.shape[1]
    res = w2.shape[1]
    # h.view(n, 128, 4, 4) in the PyTorch module hard-requires resSize == 2048.
    assert res == 128 * 4 * 4, "MLP_G.view(n, 128, 4, 4) requires resSize == 2048"

    vmem = pl.BlockSpec(memory_space=pltpu.MemorySpace.VMEM)

    if n <= NO_GRID_MAX:
        # Small/medium batch: one invocation, no grid, whole-array VMEM
        # operands, a single contiguous output DMA.
        h = pl.pallas_call(
            mlp_g_kernel,
            out_shape=jax.ShapeDtypeStruct((n, res), jnp.float32),
            in_specs=[vmem] * 7,
            out_specs=vmem,
            compiler_params=pltpu.CompilerParams(
                vmem_limit_bytes=VMEM_LIMIT_BYTES),
            cost_estimate=_cost_estimate(n, nz, att_size, ngh_p, res),
        )(noise, att, w1n, w1a, b1, w2, b2)
    else:
        # Large batch: adaptive batch tile; weights stay VMEM-resident
        # (constant index_maps); batch axis is "parallel" so v7x's megacore
        # splits tiles across its two TensorCores (no-op on v5e/v6e).
        tm, n_tiles = _choose_batch_tile(n, _tm_max())
        n_pad = tm * n_tiles
        if n_pad != n:
            noise = jnp.pad(noise, ((0, n_pad - n), (0, 0)))
            att = jnp.pad(att, ((0, n_pad - n), (0, 0)))
        h = pl.pallas_call(
            mlp_g_kernel,
            out_shape=jax.ShapeDtypeStruct((n_pad, res), jnp.float32),
            grid=(n_tiles,),
            in_specs=[
                pl.BlockSpec((tm, nz), lambda i: (i, 0)),
                pl.BlockSpec((tm, att_size), lambda i: (i, 0)),
                pl.BlockSpec((nz, ngh_p), lambda i: (0, 0)),
                pl.BlockSpec((att_size, ngh_p), lambda i: (0, 0)),
                pl.BlockSpec((1, ngh_p), lambda i: (0, 0)),
                pl.BlockSpec((ngh_p, res), lambda i: (0, 0)),
                pl.BlockSpec((1, res), lambda i: (0, 0)),
            ],
            out_specs=pl.BlockSpec((tm, res), lambda i: (i, 0)),
            compiler_params=pltpu.CompilerParams(
                dimension_semantics=("parallel",),
                vmem_limit_bytes=VMEM_LIMIT_BYTES),
            cost_estimate=_cost_estimate(n_pad, nz, att_size, ngh_p, res),
        )(noise, att, w1n, w1a, b1, w2, b2)
        if n_pad != n:
            h = h[:n]

    # h.view(n, 128, 4, 4): row-major reshape of the lane-dense (n, 2048)
    # output -> metadata-only.
    g = h.reshape(n, 128, 4, 4)
    return g, h


def reference_forward_prepared(noise, att, prepared):
    """Plain-JAX model using the same split/padded/bf16 weights as the kernel."""
    w1n, w1a, b1, w2, b2 = prepared
    h1 = jnp.dot(noise, w1n) + jnp.dot(att, w1a) + b1
    h1 = jnp.where(h1 > 0.0, h1, 0.2 * h1)
    h2 = jnp.dot(h1.astype(jnp.bfloat16), w2,
                 preferred_element_type=jnp.float32) + b2
    h = jnp.maximum(h2, 0.0)
    return h.reshape(noise.shape[0], 128, 4, 4), h


def reference_forward_f32(noise, att, params):
    """Pure f32 reference matching the PyTorch module exactly."""
    w1, b1, w2, b2 = params
    hp = jax.lax.Precision.HIGHEST
    x = jnp.concatenate([noise, att], axis=1)
    h1 = jnp.dot(x, w1, precision=hp) + b1
    h1 = jnp.where(h1 > 0.0, h1, 0.2 * h1)
    h2 = jnp.dot(h1, w2, precision=hp) + b2
    h = jnp.maximum(h2, 0.0)
    return h.reshape(noise.shape[0], 128, 4, 4), h


if __name__ == "__main__":
    # Small shapes consistent with the module; view(n, 128, 4, 4) forces
    # resSize == 2048.
    att_size = 16
    nz = 16
    ngh = 64
    res_size = 128 * 4 * 4  # 2048

    key = jax.random.PRNGKey(0)
    k_params, k_data = jax.random.split(key)

    params = init_params(k_params, att_size, nz, ngh, res_size)
    prepared = prepare_params(params, nz)

    # batch=8 and batch=600 exercise the raised no-grid path; batch=1300
    # exercises the adaptive-TM gridded "parallel" path with ragged padding.
    for batch in (8, 600, 1300):
        kn, ka = jax.random.split(jax.random.fold_in(k_data, batch))
        noise = jax.random.normal(kn, (batch, nz), dtype=jnp.float32)
        att = jax.random.normal(ka, (batch, att_size), dtype=jnp.float32)

        g, h = mlp_g_forward(noise, att, prepared)
        jax.block_until_ready((g, h))

        assert g.shape == (batch, 128, 4, 4)
        assert h.shape == (batch, res_size)

        # Tight check vs. a plain-JAX model using identical bf16 w2 / padded
        # weights (fc1 precision may differ slightly between Mosaic and XLA
        # f32 matmul paths, hence the modest tolerance).
        g_ref, h_ref = reference_forward_prepared(noise, att, prepared)
        assert jnp.allclose(h, h_ref, atol=1e-3, rtol=5e-3), "mismatch (prepared ref)"
        assert jnp.allclose(g, g_ref, atol=1e-3, rtol=5e-3), "mismatch (prepared ref, g)"

        # Loose check vs. the pure-f32 PyTorch-equivalent reference
        # (bf16 w2 changes numerics slightly).
        _, h32 = reference_forward_f32(noise, att, params)
        assert jnp.allclose(h, h32, atol=2e-3, rtol=5e-2), "mismatch (f32 ref)"

    print("KERNEL_OK")
</pallas_src>

<mosaic_0001>
module attributes {stable_mosaic.version = 11 : i64} {
  func.func @mlp_g_kernel(%arg0: memref<8x16xf32, #tpu.memory_space<vmem>>, %arg1: memref<8x16xf32, #tpu.memory_space<vmem>>, %arg2: memref<16x128xf32, #tpu.memory_space<vmem>>, %arg3: memref<16x128xf32, #tpu.memory_space<vmem>>, %arg4: memref<1x128xf32, #tpu.memory_space<vmem>>, %arg5: memref<128x2048xbf16, #tpu.memory_space<vmem>>, %arg6: memref<1x2048xf32, #tpu.memory_space<vmem>>, %arg7: memref<8x2048xf32, #tpu.memory_space<vmem>>) attributes {dimension_semantics = [], scalar_prefetch = 0 : i64, scratch_operands = 0 : i64, tpu.core_type = #tpu.core_type<tc>} {
    %c0 = arith.constant 0 : index
    %c0_0 = arith.constant 0 : index
    %0 = vector.load %arg0[%c0, %c0_0] : memref<8x16xf32, #tpu.memory_space<vmem>>, vector<8x16xf32>
    %c0_1 = arith.constant 0 : index
    %c0_2 = arith.constant 0 : index
    %1 = vector.load %arg2[%c0_1, %c0_2] : memref<16x128xf32, #tpu.memory_space<vmem>>, vector<16x128xf32>
    %cst = arith.constant dense<0.000000e+00> : vector<8x128xf32>
    %2 = tpu.matmul %0, %1, %cst {dimension_numbers = #tpu.dot_dimension_numbers<[1], [0], [0], [1], [0, 0, 1, 1], [], []>} : vector<8x16xf32>, vector<16x128xf32>, vector<8x128xf32> -> vector<8x128xf32>
    %c0_3 = arith.constant 0 : index
    %c0_4 = arith.constant 0 : index
    %3 = vector.load %arg1[%c0_3, %c0_4] : memref<8x16xf32, #tpu.memory_space<vmem>>, vector<8x16xf32>
    %c0_5 = arith.constant 0 : index
    %c0_6 = arith.constant 0 : index
    %4 = vector.load %arg3[%c0_5, %c0_6] : memref<16x128xf32, #tpu.memory_space<vmem>>, vector<16x128xf32>
    %cst_7 = arith.constant dense<0.000000e+00> : vector<8x128xf32>
    %5 = tpu.matmul %3, %4, %cst_7 {dimension_numbers = #tpu.dot_dimension_numbers<[1], [0], [0], [1], [0, 0, 1, 1], [], []>} : vector<8x16xf32>, vector<16x128xf32>, vector<8x128xf32> -> vector<8x128xf32>
    %6 = arith.addf %2, %5 : vector<8x128xf32>
    %c0_8 = arith.constant 0 : index
    %c0_9 = arith.constant 0 : index
    %7 = vector.load %arg4[%c0_8, %c0_9] : memref<1x128xf32, #tpu.memory_space<vmem>>, vector<1x128xf32>
    %8 = vector.broadcast %7 : vector<1x128xf32> to vector<8x128xf32>
    %9 = arith.addf %6, %8 : vector<8x128xf32>
    %cst_10 = arith.constant 0.000000e+00 : f32
    %10 = vector.broadcast %cst_10 : f32 to vector<8x128xf32>
    %11 = arith.cmpf ogt, %9, %10 : vector<8x128xf32>
    %cst_11 = arith.constant 2.000000e-01 : f32
    %12 = vector.broadcast %cst_11 : f32 to vector<8x128xf32>
    %13 = arith.mulf %12, %9 : vector<8x128xf32>
    %14 = arith.select %11, %9, %13 : vector<8x128xi1>, vector<8x128xf32>
    %15 = arith.truncf %14 : vector<8x128xf32> to vector<8x128xbf16>
    %c0_12 = arith.constant 0 : index
    %c0_13 = arith.constant 0 : index
    %16 = vector.load %arg5[%c0_12, %c0_13] : memref<128x2048xbf16, #tpu.memory_space<vmem>>, vector<128x2048xbf16>
    %cst_14 = arith.constant dense<0.000000e+00> : vector<8x2048xf32>
    %17 = tpu.matmul %15, %16, %cst_14 {dimension_numbers = #tpu.dot_dimension_numbers<[1], [0], [0], [1], [0, 0, 1, 1], [], []>} : vector<8x128xbf16>, vector<128x2048xbf16>, vector<8x2048xf32> -> vector<8x2048xf32>
    %c0_15 = arith.constant 0 : index
    %c0_16 = arith.constant 0 : index
    %18 = vector.load %arg6[%c0_15, %c0_16] : memref<1x2048xf32, #tpu.memory_space<vmem>>, vector<1x2048xf32>
    %19 = vector.broadcast %18 : vector<1x2048xf32> to vector<8x2048xf32>
    %20 = arith.addf %17, %19 : vector<8x2048xf32>
    %cst_17 = arith.constant 0.000000e+00 : f32
    %21 = vector.broadcast %cst_17 : f32 to vector<8x2048xf32>
    %22 = arith.maximumf %20, %21 : vector<8x2048xf32>
    %c0_18 = arith.constant 0 : index
    %c0_19 = arith.constant 0 : index
    %23 = vector.load %arg7[%c0_18, %c0_19] : memref<8x2048xf32, #tpu.memory_space<vmem>>, vector<8x2048xf32>
    tpu.vector_store %arg7[%c0_18, %c0_19], %22 {strides = array<i32>} : memref<8x2048xf32, #tpu.memory_space<vmem>>, vector<8x2048xf32>,
    return
  }
}

</mosaic_0001>

<bundles_post_ra>
// kernel: mlp_g_forward.1
= control target key start
LH: loop header
LB: loop body
LE: loop exit
PB: predicated region body
PF: predicated region fallthrough
CT: control target
= control target key end

     0   :  { %12 = vsyncpa [#allocation3], 0  ;;  %s1930_s0 = inlined_call_operand.hbm [shape: f32[8,16], index: 0, kind: input, shape index: {}]   ;;  %s1931_s1 = inlined_call_operand.hbm [shape: f32[8,16], index: 1, kind: input, shape index: {}]   ;;  %s1932_s2 = inlined_call_operand.hbm [shape: f32[16,128], index: 2, kind: input, shape index: {}]   ;;  %s1933_s3 = inlined_call_operand.hbm [shape: f32[16,128], index: 3, kind: input, shape index: {}]   ;;  %s1934_s4 = inlined_call_operand.vmem [shape: f32[1,128], index: 4, kind: input, shape index: {}]   ;;  %s1935_s5 = inlined_call_operand.hbm [shape: bf16[128,2048], index: 5, kind: input, shape index: {}]   ;;  %s1936_s6 = inlined_call_operand.hbm [shape: f32[1,2048], index: 6, kind: input, shape index: {}]   ;;  %s1937_s7 = inlined_call_operand.vmem [shape: f32[8,2048], index: 7, kind: output, shape index: {}]  }
   0x1   :  { %13 = vsyncpa [#allocation5], 0 }
   0x2   :  { %14 = vsyncpa [#allocation8], 0 }
   0x3   :  { %15 = vsyncpa [#allocation11], 0  ;;  %s1780_s24 = smov [#allocation4]  }
   0x4   :  { %s32_s25 = sshll.u32 %s1780_s24, 4  ;;  %s33_s25 = int_to_ptr.vmem [resolvable:$true] %s32_s25 }
   0x5   :  { %s1660_s26 = scalar_lea.vmem %s33_s25, 128  ;;  %p1665_p1 = scmp.lt.s32.totalorder %s33_s25, %s33_s25 }
   0x6   :  { %p1661_p0 = scmp.ne.s32.totalorder %s33_s25, %s1660_s26  ;;  %p1666_p2 = scmp.lt.s32.totalorder %s1660_s26, %s1660_s26 }
   0x8   :  { %p1667_p3 = por %p1666_p2, %p1665_p1 }
   0xa   :  { %p1668_p4 = pnand %p1667_p3, %p1661_p0 }
   0xc   :  { %1671 = shalt.err (!%p1668_p4)
}
   0xd   :  { %35 = dma.hbm_to_vmem [thread:$0]  %s1931_s1, 128, %s33_s25, [#allocation5]  }
   0xe   :  { %s1781_s29 = smov [#allocation7]   ;;  %s1782_s8 = smov [#allocation2]  }
   0xf   :  { %s53_s30 = sshll.u32 %s1781_s29, 4  ;;  %s22_s9 = sshll.u32 %s1782_s8, 4  ;;  %s54_s30 = int_to_ptr.vmem [resolvable:$true] %s53_s30  ;;  %s23_s9 = int_to_ptr.vmem [resolvable:$true] %s22_s9 }
  0x10   :  { %s1680_s10 = scalar_lea.vmem %s54_s30, 256  ;;  %p1685_p6 = scmp.lt.s32.totalorder %s54_s30, %s54_s30 }
  0x11   :  { %p1681_p5 = scmp.ne.s32.totalorder %s54_s30, %s1680_s10  ;;  %p1686_p7 = scmp.lt.s32.totalorder %s1680_s10, %s1680_s10 }
  0x13   :  { %p1687_p8 = por %p1686_p7, %p1685_p6 }
  0x15   :  { %p1688_p9 = pnand %p1687_p8, %p1681_p5 }
  0x17   :  { %1691 = shalt.err (!%p1688_p9)
}
  0x18   :  { %s1783_s11 = smov 128   ;;  %s1784_s12 = smov 8  }
  0x19   :  { %59 = dma.hbm_to_vmem [thread:$0]  %s1933_s3, 256, %s54_s30, [#allocation8], %s1783_s11, %s1783_s11, %s1784_s12  }
  0x1a   :  { %s1700_s1 = scalar_lea.vmem %s23_s9, 128  ;;  %p1705_p11 = scmp.lt.s32.totalorder %s23_s9, %s23_s9 }
  0x1b   :  { %p1701_p10 = scmp.ne.s32.totalorder %s23_s9, %s1700_s1  ;;  %p1706_p12 = scmp.lt.s32.totalorder %s1700_s1, %s1700_s1 }
  0x1d   :  { %p1707_p13 = por %p1706_p12, %p1705_p11 }
  0x1f   :  { %p1708_p0 = pnand %p1707_p13, %p1701_p10 }
  0x21   :  { %1711 = shalt.err (!%p1708_p0)
}
  0x22   :  { %25 = dma.hbm_to_vmem [thread:$0]  %s1930_s0, 128, %s23_s9, [#allocation3]  }
  0x23   :  { %s1785_s17 = smov [#allocation6]   ;;  %s1786_s19 = smov [#allocation9]  }
  0x24   :  { %s41_s18 = sshll.u32 %s1785_s17, 4  ;;  %s67_s20 = sshll.u32 %s1786_s19, 4  ;;  %s42_s18 = int_to_ptr.vmem [resolvable:$true] %s41_s18  ;;  %s68_s20 = int_to_ptr.vmem [resolvable:$true] %s67_s20 }
  0x25   :  { %s1720_s21 = scalar_lea.vmem %s42_s18, 256  ;;  %p1725_p2 = scmp.lt.s32.totalorder %s42_s18, %s42_s18 }
  0x26   :  { %p1721_p1 = scmp.ne.s32.totalorder %s42_s18, %s1720_s21  ;;  %p1726_p3 = scmp.lt.s32.totalorder %s1720_s21, %s1720_s21 }
  0x28   :  { %p1727_p4 = por %p1726_p3, %p1725_p2 }
  0x2a   :  { %p1728_p5 = pnand %p1727_p4, %p1721_p1 }
  0x2c   :  { %1731 = shalt.err (!%p1728_p5)
}
  0x2d   :  { %47 = dma.hbm_to_vmem [thread:$0]  %s1932_s2, 256, %s42_s18, [#allocation5], %s1783_s11, %s1783_s11, %s1784_s12  }
  0x2e   :  { %s1740_s23 = scalar_lea.vmem %s68_s20, 16384  ;;  %p1745_p7 = scmp.lt.s32.totalorder %s68_s20, %s68_s20 }
  0x2f   :  { %p1741_p6 = scmp.ne.s32.totalorder %s68_s20, %s1740_s23  ;;  %p1746_p8 = scmp.lt.s32.totalorder %s1740_s23, %s1740_s23 }
  0x31   :  { %p1747_p9 = por %p1746_p8, %p1745_p7 }
  0x33   :  { %p1748_p10 = pnand %p1747_p9, %p1741_p6 }
  0x35   :  { %1751 = shalt.err (!%p1748_p10)
}
  0x36   :  { %s1787_s0 = smov 1024   ;;  %s1788_s24 = smov 64  }
  0x37   :  { %73 = dma.hbm_to_vmem [thread:$0]  %s1935_s5, 16384, %s68_s20, [#allocation8], %s1787_s0, %s1787_s0, %s1788_s24  }
  0x38   :  { %s1789_s27 = smov [#allocation10]  }
  0x39   :  { %s80_s28 = sshll.u32 %s1789_s27, 4  ;;  %s81_s28 = int_to_ptr.vmem [resolvable:$true] %s80_s28 }
  0x3a   :  { %s1760_s29 = scalar_lea.vmem %s81_s28, 256  ;;  %p1765_p12 = scmp.lt.s32.totalorder %s81_s28, %s81_s28 }
  0x3b   :  { %p1761_p11 = scmp.ne.s32.totalorder %s81_s28, %s1760_s29  ;;  %p1766_p13 = scmp.lt.s32.totalorder %s1760_s29, %s1760_s29 }
  0x3d   :  { %p1767_p0 = por %p1766_p13, %p1765_p12 }
  0x3f   :  { %p1768_p1 = pnand %p1767_p0, %p1761_p11 }
  0x41   :  { %1771 = shalt.err (!%p1768_p1)
}
  0x42   :  { %83 = dma.hbm_to_vmem [thread:$0]  %s1936_s6, 256, %s81_s28, [#allocation11]  }
  0x43   :  { %1772 = dma.done.wait [#allocation3], 128  }
  0x44   :  { %1773 = vsyncadd [#allocation3], 4294967168 }
  0x45   :  { %1774 = dma.done.wait [#allocation5], 384  }
  0x46   :  { %1775 = vsyncadd [#allocation5], 4294966912 }
  0x47   :  { %1776 = dma.done.wait [#allocation8], 16640  }
  0x48   :  { %1777 = vsyncadd [#allocation8], 4294950656 }
  0x49   :  { %1778 = dma.done.wait [#allocation11], 256  }
  0x4a   :  { %1779 = vsyncadd [#allocation11], 4294967040  ;;  %v1790_v0 = vmov 0.0   ;;  %vm1791_vm0 = vmmov 0   ;;  %v108_v1 = vld [vmem:[#allocation7 + $0x8] sm:$0xff]  ;;  %v105_v2 = vld [vmem:[#allocation6 + $0x8] sm:$0xff] }
  0x4b   :  { %1625 = vmatprep.subr.mxu0 %v1790_v0  ;;  %1632 = vmatprep.subr.mxu1 %v1790_v0  ;;  %v107_v3 = vld [vmem:[#allocation7] sm:$0xff]  ;;  %v104_v4 = vld [vmem:[#allocation6] sm:$0xff]  ;;  %v106_v5 = vld [vmem:[#allocation4] sm:$0xff]  ;;  %vm109_vm1 = vcmask 130048  }
  0x4c   :  { %1629 = vmatprep.mubr.msk.f32.mxu0 %vm1791_vm0, %v1790_v0  ;;  %1636 = vmatprep.mubr.msk.f32.mxu1 %vm1791_vm0, %v1790_v0  ;;  %v103_v6 = vld [vmem:[#allocation2] sm:$0xff]  ;;  %v380_v7 = vld [vmem:[#allocation9 + $0x380] sm:$0xff]  ;;  %v381_v9 = vld [vmem:[#allocation9 + $0x388] sm:$0xff] }
  0x4d   :  { %1626 = vmatpush3.msra.mxu0 %v108_v1  ;;  %1633 = vmatpush3.msra.mxu1 %v105_v2  ;;  %v388_v8 = vld [vmem:[#allocation9 + $0x3c0] sm:$0xff]  ;;  %v389_v12 = vld [vmem:[#allocation9 + $0x3c8] sm:$0xff] }
  0x4e   :  { %1627 = vmatprep.subr.mxu0 %v1790_v0  ;;  %1634 = vmatprep.subr.mxu1 %v1790_v0  ;;  %v1603_v10 = vcombine.low %v380_v7, %v388_v8  ;;  %v1604_v11 = vcombine.high %v380_v7, %v388_v8  ;;  %v364_v13 = vld [vmem:[#allocation9 + $0x300] sm:$0xff]  ;;  %v1605_v15 = vcombine.low %v381_v9, %v389_v12  ;;  %v365_v17 = vld [vmem:[#allocation9 + $0x308] sm:$0xff]  ;;  %v382_v7 = vld [vmem:[#allocation9 + $0x390] sm:$0xff] }
  0x4f   :  { %1628 = vmatpush3.msra.mxu0 %v107_v3  ;;  %1635 = vmatpush3.msra.mxu1 %v104_v4  ;;  %v372_v14 = vld [vmem:[#allocation9 + $0x340] sm:$0xff]  ;;  %v1606_v16 = vcombine.high %v381_v9, %v389_v12  ;;  %v373_v18 = vld [vmem:[#allocation9 + $0x348] sm:$0xff]  ;;  %v390_v8 = vld [vmem:[#allocation9 + $0x3d0] sm:$0xff] }
  0x50   :  { %1630 = vmatmul.mubr.msk.f32.vlgmr.msra.gmra.mxu0 %vm109_vm1, %v106_v5  ;;  %1637 = vmatmul.mubr.msk.f32.vlgmr.msra.gmra.mxu1 %vm109_vm1, %v103_v6  ;;  %v348_v19 = vld [vmem:[#allocation9 + $0x280] sm:$0xff]  ;;  %v1588_v20 = vcombine.high %v364_v13, %v372_v14  ;;  %v1590_v21 = vcombine.high %v365_v17, %v373_v18  ;;  %v349_v23 = vld [vmem:[#allocation9 + $0x288] sm:$0xff]  ;;  %v1587_v25 = vcombine.low %v364_v13, %v372_v14  ;;  %v383_v9 = vld [vmem:[#allocation9 + $0x398] sm:$0xff] }
  0x51   :  { %1120 = vmatprep.subr.bf16.mxu0 %v1604_v11  ;;  %v356_v22 = vld [vmem:[#allocation9 + $0x2c0] sm:$0xff]  ;;  %v357_v24 = vld [vmem:[#allocation9 + $0x2c8] sm:$0xff]  ;;  %1161 = vmatprep.subr.bf16.mxu1 %v1606_v16  ;;  %v1589_v26 = vcombine.low %v365_v17, %v373_v18  ;;  %v391_v11 = vld [vmem:[#allocation9 + $0x3d8] sm:$0xff]  ;;  %v1607_v12 = vcombine.low %v382_v7, %v390_v8 }
  0x52   :  { %1121 = vmatpush1.bf16.msra.mxu0 %v1603_v10  ;;  %1162 = vmatpush1.bf16.msra.mxu1 %v1605_v15  ;;  %v1572_v27 = vcombine.high %v348_v19, %v356_v22  ;;  %v1574_v28 = vcombine.high %v349_v23, %v357_v24  ;;  %v332_v29 = vld [vmem:[#allocation9 + $0x200] sm:$0xff]  ;;  %v333_v31 = vld [vmem:[#allocation9 + $0x208] sm:$0xff]  ;;  %v1571_v33 = vcombine.low %v348_v19, %v356_v22  ;;  %v1792_v15 = vmov 0   ;;  %v1490_v18 = vld [vmem:[%s1934_s4] ss:$0 sm:$0xff] }
  0x53   :  { %1122 = vmatprep.subr.bf16.mxu0 %v1588_v20  ;;  %1163 = vmatprep.subr.bf16.mxu1 %v1590_v21  ;;  %v340_v30 = vld [vmem:[#allocation9 + $0x240] sm:$0xff]  ;;  %v341_v32 = vld [vmem:[#allocation9 + $0x248] sm:$0xff]  ;;  %v1573_v34 = vcombine.low %v349_v23, %v357_v24  ;;  %v1608_v10 = vcombine.high %v382_v7, %v390_v8  ;;  %v1609_v13 = vcombine.low %v383_v9, %v391_v11  ;;  %v366_v23 = vld [vmem:[#allocation9 + $0x310] sm:$0xff] }
  0x54   :  { %v1556_v35 = vcombine.high %v332_v29, %v340_v30  ;;  %v1558_v36 = vcombine.high %v333_v31, %v341_v32  ;;  %v316_v37 = vld [vmem:[#allocation9 + $0x180] sm:$0xff]  ;;  %v317_v39 = vld [vmem:[#allocation9 + $0x188] sm:$0xff]  ;;  %v1555_v41 = vcombine.low %v332_v29, %v340_v30  ;;  %v1557_v42 = vcombine.low %v333_v31, %v341_v32  ;;  %1152 = vmatprep.mubr.bf16.mxu0 %v1792_v15  ;;  %v350_v32 = vld [vmem:[#allocation9 + $0x290] sm:$0xff] }
  0x55   :  { %v324_v38 = vld [vmem:[#allocation9 + $0x1c0] sm:$0xff]  ;;  %v325_v40 = vld [vmem:[#allocation9 + $0x1c8] sm:$0xff]  ;;  %v1610_v14 = vcombine.high %v383_v9, %v391_v11  ;;  %1193 = vmatprep.mubr.bf16.mxu1 %v1792_v15  ;;  %v270_v8 = vld [vmem:[#allocation9 + $0x10] sm:$0xff] }
  0x56   :  { %1123 = vmatpush1.bf16.msra.mxu0 %v1587_v25  ;;  %1164 = vmatpush1.bf16.msra.mxu1 %v1589_v26  ;;  %v1540_v43 = vcombine.high %v316_v37, %v324_v38  ;;  %v1542_v44 = vcombine.high %v317_v39, %v325_v40  ;;  %v300_v45 = vld [vmem:[#allocation9 + $0x100] sm:$0xff]  ;;  %v301_v47 = vld [vmem:[#allocation9 + $0x108] sm:$0xff]  ;;  %v1539_v49 = vcombine.low %v316_v37, %v324_v38  ;;  %v374_v25 = vld [vmem:[#allocation9 + $0x350] sm:$0xff] }
  0x57   :  { %1124 = vmatprep.subr.bf16.mxu0 %v1572_v27  ;;  %1165 = vmatprep.subr.bf16.mxu1 %v1574_v28  ;;  %v308_v46 = vld [vmem:[#allocation9 + $0x140] sm:$0xff]  ;;  %v309_v48 = vld [vmem:[#allocation9 + $0x148] sm:$0xff]  ;;  %v1541_v50 = vcombine.low %v317_v39, %v325_v40  ;;  %v367_v26 = vld [vmem:[#allocation9 + $0x318] sm:$0xff]  ;;  %v1592_v30 = vcombine.high %v366_v23, %v374_v25 }
  0x58   :  { %v1524_v51 = vcombine.high %v300_v45, %v308_v46  ;;  %v1526_v52 = vcombine.high %v301_v47, %v309_v48  ;;  %v1523_v53 = vcombine.low %v300_v45, %v308_v46  ;;  %v1525_v54 = vcombine.low %v301_v47, %v309_v48  ;;  %v284_v55 = vld [vmem:[#allocation9 + $0x80] sm:$0xff]  ;;  %v285_v57 = vld [vmem:[#allocation9 + $0x88] sm:$0xff]  ;;  %v375_v27 = vld [vmem:[#allocation9 + $0x358] sm:$0xff] }
  0x59   :  { %v292_v56 = vld [vmem:[#allocation9 + $0xc0] sm:$0xff]  ;;  %v293_v59 = vld [vmem:[#allocation9 + $0xc8] sm:$0xff]  ;;  %v1594_v31 = vcombine.high %v367_v26, %v375_v27  ;;  %v1593_v37 = vcombine.low %v367_v26, %v375_v27  ;;  %v334_v40 = vld [vmem:[#allocation9 + $0x210] sm:$0xff] }
  0x5a   :  { %1125 = vmatpush1.bf16.msra.mxu0 %v1571_v33  ;;  %1166 = vmatpush1.bf16.msra.mxu1 %v1573_v34  ;;  %v1508_v58 = vcombine.high %v284_v55, %v292_v56  ;;  %v1507_v60 = vcombine.low %v284_v55, %v292_v56  ;;  %v1509_v61 = vcombine.low %v285_v57, %v293_v59  ;;  %v268_v63 = vld [vmem:[#allocation9] sm:$0xff]  ;;  %v269_v1 = vld [vmem:[#allocation9 + $0x8] sm:$0xff]  ;;  %v358_v33 = vld [vmem:[#allocation9 + $0x2d0] sm:$0xff] }
  0x5b   :  { %1126 = vmatprep.subr.bf16.mxu0 %v1556_v35  ;;  %1167 = vmatprep.subr.bf16.mxu1 %v1558_v36  ;;  %v1510_v62 = vcombine.high %v285_v57, %v293_v59  ;;  %v276_v0 = vld [vmem:[#allocation9 + $0x40] sm:$0xff]  ;;  %v277_v3 = vld [vmem:[#allocation9 + $0x48] sm:$0xff]  ;;  %v351_v34 = vld [vmem:[#allocation9 + $0x298] sm:$0xff]  ;;  %v1591_v36 = vcombine.low %v366_v23, %v374_v25  ;;  %v1576_v38 = vcombine.high %v350_v32, %v358_v33 }
  0x5c   :  { %v1492_v2 = vcombine.high %v268_v63, %v276_v0  ;;  %v1491_v4 = vcombine.low %v268_v63, %v276_v0  ;;  %v1493_v5 = vcombine.low %v269_v1, %v277_v3  ;;  %v1494_v6 = vcombine.high %v269_v1, %v277_v3  ;;  %v359_v35 = vld [vmem:[#allocation9 + $0x2d8] sm:$0xff]  ;;  %v318_v48 = vld [vmem:[#allocation9 + $0x190] sm:$0xff]  ;;  %v368_v25 = vld [vmem:[#allocation9 + $0x320] sm:$0xff] }
  0x5d   :  { %v1578_v39 = vcombine.high %v351_v34, %v359_v35  ;;  %v1577_v45 = vcombine.low %v351_v34, %v359_v35  ;;  %v302_v56 = vld [vmem:[#allocation9 + $0x110] sm:$0xff]  ;;  %v311_v59 = vld [vmem:[#allocation9 + $0x158] sm:$0xff]  ;;  %v376_v26 = vld [vmem:[#allocation9 + $0x360] sm:$0xff] }
  0x5e   :  { %1127 = vmatpush1.bf16.msra.mxu0 %v1555_v41  ;;  %1168 = vmatpush1.bf16.msra.mxu1 %v1557_v42  ;;  %v342_v41 = vld [vmem:[#allocation9 + $0x250] sm:$0xff]  ;;  %v335_v42 = vld [vmem:[#allocation9 + $0x218] sm:$0xff]  ;;  %v369_v27 = vld [vmem:[#allocation9 + $0x328] sm:$0xff] }
  0x5f   :  { %1128 = vmatprep.subr.bf16.mxu0 %v1540_v43  ;;  %1169 = vmatprep.subr.bf16.mxu1 %v1542_v44  ;;  %v343_v43 = vld [vmem:[#allocation9 + $0x258] sm:$0xff]  ;;  %v1575_v44 = vcombine.low %v350_v32, %v358_v33  ;;  %v1560_v46 = vcombine.high %v334_v40, %v342_v41  ;;  %v310_v57 = vld [vmem:[#allocation9 + $0x150] sm:$0xff]  ;;  %v1596_v32 = vcombine.high %v368_v25, %v376_v26  ;;  %v352_v34 = vld [vmem:[#allocation9 + $0x2a0] sm:$0xff] }
  0x60   :  { %v1562_v47 = vcombine.high %v335_v42, %v343_v43  ;;  %v286_v0 = vld [vmem:[#allocation9 + $0x90] sm:$0xff]  ;;  %v295_v3 = vld [vmem:[#allocation9 + $0xd8] sm:$0xff]  ;;  %v360_v35 = vld [vmem:[#allocation9 + $0x2e0] sm:$0xff] }
  0x61   :  { %v294_v1 = vld [vmem:[#allocation9 + $0xd0] sm:$0xff]  ;;  %v279_v11 = vld [vmem:[#allocation9 + $0x58] sm:$0xff] }
  0x62   :  { %1129 = vmatpush1.bf16.msra.mxu0 %v1539_v49  ;;  %1170 = vmatpush1.bf16.msra.mxu1 %v1541_v50  ;;  %v326_v49 = vld [vmem:[#allocation9 + $0x1d0] sm:$0xff]  ;;  %v319_v50 = vld [vmem:[#allocation9 + $0x198] sm:$0xff] }
  0x63   :  { %1130 = vmatprep.subr.bf16.mxu0 %v1524_v51  ;;  %1171 = vmatprep.subr.bf16.mxu1 %v1526_v52  ;;  %v327_v51 = vld [vmem:[#allocation9 + $0x1d8] sm:$0xff]  ;;  %v1559_v52 = vcombine.low %v334_v40, %v342_v41  ;;  %v278_v9 = vld [vmem:[#allocation9 + $0x50] sm:$0xff]  ;;  %v1580_v40 = vcombine.high %v352_v34, %v360_v35 }
  0x64   :  { %v1546_v55 = vcombine.high %v319_v50, %v327_v51 }
  0x66   :  { %1131 = vmatpush1.bf16.msra.mxu0 %v1523_v53  ;;  %1172 = vmatpush1.bf16.msra.mxu1 %v1525_v54  ;;  %v1561_v53 = vcombine.low %v335_v42, %v343_v43  ;;  %v1544_v54 = vcombine.high %v318_v48, %v326_v49  ;;  %v336_v42 = vld [vmem:[#allocation9 + $0x220] sm:$0xff] }
  0x67   :  { %1132 = vmatprep.subr.bf16.mxu0 %v1508_v58  ;;  %1173 = vmatprep.subr.bf16.mxu1 %v1510_v62  ;;  %v303_v58 = vld [vmem:[#allocation9 + $0x118] sm:$0xff]  ;;  %v1528_v62 = vcombine.high %v302_v56, %v310_v57  ;;  %v344_v43 = vld [vmem:[#allocation9 + $0x260] sm:$0xff] }
  0x68   :  { %v1530_v63 = vcombine.high %v303_v58, %v311_v59 }
  0x6a   :  { %1133 = vmatpush1.bf16.msra.mxu0 %v1507_v60  ;;  %1174 = vmatpush1.bf16.msra.mxu1 %v1509_v61  ;;  %v1543_v60 = vcombine.low %v318_v48, %v326_v49  ;;  %v1545_v61 = vcombine.low %v319_v50, %v327_v51  ;;  %v1564_v48 = vcombine.high %v336_v42, %v344_v43  ;;  %v320_v50 = vld [vmem:[#allocation9 + $0x1a0] sm:$0xff] }
  0x6b   :  { %1134 = vmatprep.subr.bf16.mxu0 %v1492_v2  ;;  %1175 = vmatprep.subr.bf16.mxu1 %v1494_v6  ;;  %v287_v2 = vld [vmem:[#allocation9 + $0x98] sm:$0xff]  ;;  %v1512_v6 = vcombine.high %v286_v0, %v294_v1  ;;  %v328_v51 = vld [vmem:[#allocation9 + $0x1e0] sm:$0xff] }
  0x6c   :  { %v1514_v7 = vcombine.high %v287_v2, %v295_v3 }
  0x6e   :  { %1135 = vmatpush1.bf16.msra.mxu0 %v1491_v4  ;;  %1176 = vmatpush1.bf16.msra.mxu1 %v1493_v5  ;;  %v1527_v4 = vcombine.low %v302_v56, %v310_v57  ;;  %v1529_v5 = vcombine.low %v303_v58, %v311_v59  ;;  %v1548_v56 = vcombine.high %v320_v50, %v328_v51  ;;  %v304_v58 = vld [vmem:[#allocation9 + $0x120] sm:$0xff] }
  0x6f   :  { %1202 = vmatprep.subr.bf16.mxu0 %v1608_v10  ;;  %1243 = vmatprep.subr.bf16.mxu1 %v1610_v14  ;;  %v271_v10 = vld [vmem:[#allocation9 + $0x18] sm:$0xff]  ;;  %v1496_v14 = vcombine.high %v270_v8, %v278_v9  ;;  %v312_v59 = vld [vmem:[#allocation9 + $0x160] sm:$0xff] }
 0x110   :  { %v179_v16 = vpop.f32.mrf.mxu0  ;;  %v252_v17 = vpop.f32.mrf.mxu1 }
 0x111   :  { %v253_v19 = vadd.f32 %v252_v17, %v179_v16  ;;  %v1498_v16 = vcombine.high %v271_v10, %v279_v11  ;;  %v384_v17 = vld [vmem:[#allocation9 + $0x3a0] sm:$0xff] }
 0x112   :  { %v1631_v20 = vpop.f32.mrf.mxu0  ;;  %v1638_v21 = vpop.f32.mrf.mxu1 }
 0x113   :  { %v263_v22 = vadd.f32 %v1490_v18, %v253_v19  ;;  %v392_v18 = vld [vmem:[#allocation9 + $0x3e0] sm:$0xff]  ;;  %v385_v19 = vld [vmem:[#allocation9 + $0x3a8] sm:$0xff]  ;;  %v1495_v21 = vcombine.low %v270_v8, %v278_v9 }
 0x114   :  { %v393_v20 = vld [vmem:[#allocation9 + $0x3e8] sm:$0xff]  ;;  %v1612_v23 = vcombine.high %v384_v17, %v392_v18 }
 0x115   :  { %vm264_vm2 = vcmp.gt.f32.partialorder %v263_v22, 0.0  ;;  %v265_v24 = vmul.f32 0.2, %v263_v22 }
 0x117   :  { %v266_v28 = vsel %vm264_vm2, %v263_v22, %v265_v24  ;;  %v1497_v22 = vcombine.low %v271_v10, %v279_v11  ;;  %v1614_v24 = vcombine.high %v385_v19, %v393_v20  ;;  %v272_v10 = vld [vmem:[#allocation9 + $0x20] sm:$0xff] }
 0x118   :  { %v1856_v29 = vpack.c.bf16 %v266_v28, %v266_v28  ;;  %v377_v28 = vld [vmem:[#allocation9 + $0x368] sm:$0xff]  ;;  %v280_v11 = vld [vmem:[#allocation9 + $0x60] sm:$0xff] }
 0x119   :  { %v1598_v33 = vcombine.high %v369_v27, %v377_v28 }
 0x11a   :  { %1153 = vmatmul.mubr.bf16.vlgmr.msra.gmra.mxu0 %v1856_v29  ;;  %1194 = vmatmul.mubr.bf16.vlgmr.msra.gmra.mxu1 %v1856_v29 }
 0x11b   :  { %1203 = vmatpush1.bf16.msra.mxu0 %v1607_v12  ;;  %1244 = vmatpush1.bf16.msra.mxu1 %v1609_v13  ;;  %v1511_v12 = vcombine.low %v286_v0, %v294_v1  ;;  %v1513_v13 = vcombine.low %v287_v2, %v295_v3  ;;  %v1532_v0 = vcombine.high %v304_v58, %v312_v59  ;;  %v288_v2 = vld [vmem:[#allocation9 + $0xa0] sm:$0xff] }
 0x11c   :  { %1204 = vmatprep.subr.bf16.mxu0 %v1592_v30  ;;  %1245 = vmatprep.subr.bf16.mxu1 %v1594_v31  ;;  %v1611_v30 = vcombine.low %v384_v17, %v392_v18  ;;  %v1613_v31 = vcombine.low %v385_v19, %v393_v20  ;;  %v296_v3 = vld [vmem:[#allocation9 + $0xe0] sm:$0xff]  ;;  %v1500_v17 = vcombine.high %v272_v10, %v280_v11  ;;  %v386_v19 = vld [vmem:[#allocation9 + $0x3b0] sm:$0xff] }
 0x11d   :  { %1234 = vmatprep.mubr.bf16.mxu0 %v1792_v15  ;;  %1275 = vmatprep.mubr.bf16.mxu1 %v1792_v15  ;;  %v1516_v8 = vcombine.high %v288_v2, %v296_v3  ;;  %v394_v20 = vld [vmem:[#allocation9 + $0x3f0] sm:$0xff] }
 0x11f   :  { %1205 = vmatpush1.bf16.msra.mxu0 %v1591_v36  ;;  %1246 = vmatpush1.bf16.msra.mxu1 %v1593_v37  ;;  %v353_v36 = vld [vmem:[#allocation9 + $0x2a8] sm:$0xff] }
 0x120   :  { %1206 = vmatprep.subr.bf16.mxu0 %v1576_v38  ;;  %1247 = vmatprep.subr.bf16.mxu1 %v1578_v39  ;;  %v361_v37 = vld [vmem:[#allocation9 + $0x2e8] sm:$0xff]  ;;  %v1595_v38 = vcombine.low %v368_v25, %v376_v26  ;;  %v1597_v39 = vcombine.low %v369_v27, %v377_v28  ;;  %v1616_v25 = vcombine.high %v386_v19, %v394_v20  ;;  %v370_v27 = vld [vmem:[#allocation9 + $0x330] sm:$0xff] }
 0x121   :  { %v1582_v41 = vcombine.high %v353_v36, %v361_v37  ;;  %v378_v28 = vld [vmem:[#allocation9 + $0x370] sm:$0xff] }
 0x123   :  { %1207 = vmatpush1.bf16.msra.mxu0 %v1575_v44  ;;  %1248 = vmatpush1.bf16.msra.mxu1 %v1577_v45  ;;  %v337_v44 = vld [vmem:[#allocation9 + $0x228] sm:$0xff] }
 0x124   :  { %1208 = vmatprep.subr.bf16.mxu0 %v1560_v46  ;;  %1249 = vmatprep.subr.bf16.mxu1 %v1562_v47  ;;  %v345_v45 = vld [vmem:[#allocation9 + $0x268] sm:$0xff]  ;;  %v1579_v46 = vcombine.low %v352_v34, %v360_v35  ;;  %v1581_v47 = vcombine.low %v353_v36, %v361_v37  ;;  %v1600_v34 = vcombine.high %v370_v27, %v378_v28  ;;  %v354_v36 = vld [vmem:[#allocation9 + $0x2b0] sm:$0xff] }
 0x125   :  { %v1566_v49 = vcombine.high %v337_v44, %v345_v45  ;;  %v362_v37 = vld [vmem:[#allocation9 + $0x2f0] sm:$0xff] }
 0x127   :  { %1209 = vmatpush1.bf16.msra.mxu0 %v1559_v52  ;;  %1250 = vmatpush1.bf16.msra.mxu1 %v1561_v53  ;;  %v321_v52 = vld [vmem:[#allocation9 + $0x1a8] sm:$0xff] }
 0x128   :  { %1210 = vmatprep.subr.bf16.mxu0 %v1544_v54  ;;  %1251 = vmatprep.subr.bf16.mxu1 %v1546_v55  ;;  %v329_v53 = vld [vmem:[#allocation9 + $0x1e8] sm:$0xff]  ;;  %v1563_v54 = vcombine.low %v336_v42, %v344_v43  ;;  %v1565_v55 = vcombine.low %v337_v44, %v345_v45  ;;  %v1584_v42 = vcombine.high %v354_v36, %v362_v37  ;;  %v338_v44 = vld [vmem:[#allocation9 + $0x230] sm:$0xff] }
 0x129   :  { %v1550_v57 = vcombine.high %v321_v52, %v329_v53  ;;  %v346_v45 = vld [vmem:[#allocation9 + $0x270] sm:$0xff] }
 0x12b   :  { %1211 = vmatpush1.bf16.msra.mxu0 %v1543_v60  ;;  %1252 = vmatpush1.bf16.msra.mxu1 %v1545_v61  ;;  %v305_v60 = vld [vmem:[#allocation9 + $0x128] sm:$0xff] }
 0x12c   :  { %1212 = vmatprep.subr.bf16.mxu0 %v1528_v62  ;;  %1253 = vmatprep.subr.bf16.mxu1 %v1530_v63  ;;  %v313_v61 = vld [vmem:[#allocation9 + $0x168] sm:$0xff]  ;;  %v1547_v62 = vcombine.low %v320_v50, %v328_v51  ;;  %v1549_v63 = vcombine.low %v321_v52, %v329_v53  ;;  %v1568_v50 = vcombine.high %v338_v44, %v346_v45  ;;  %v322_v52 = vld [vmem:[#allocation9 + $0x1b0] sm:$0xff] }
 0x12d   :  { %v1534_v1 = vcombine.high %v305_v60, %v313_v61  ;;  %v330_v53 = vld [vmem:[#allocation9 + $0x1f0] sm:$0xff] }
 0x12f   :  { %1213 = vmatpush1.bf16.msra.mxu0 %v1527_v4  ;;  %1254 = vmatpush1.bf16.msra.mxu1 %v1529_v5  ;;  %v289_v4 = vld [vmem:[#allocation9 + $0xa8] sm:$0xff] }
 0x130   :  { %1214 = vmatprep.subr.bf16.mxu0 %v1512_v6  ;;  %1255 = vmatprep.subr.bf16.mxu1 %v1514_v7  ;;  %v297_v5 = vld [vmem:[#allocation9 + $0xe8] sm:$0xff]  ;;  %v1531_v6 = vcombine.low %v304_v58, %v312_v59  ;;  %v1533_v7 = vcombine.low %v305_v60, %v313_v61  ;;  %v1552_v58 = vcombine.high %v322_v52, %v330_v53  ;;  %v306_v59 = vld [vmem:[#allocation9 + $0x130] sm:$0xff]  ;;  %v307_v61 = vld [vmem:[#allocation9 + $0x138] sm:$0xff] }
 0x131   :  { %v1518_v9 = vcombine.high %v289_v4, %v297_v5  ;;  %v314_v60 = vld [vmem:[#allocation9 + $0x170] sm:$0xff] }
 0x133   :  { %1215 = vmatpush1.bf16.msra.mxu0 %v1511_v12  ;;  %1256 = vmatpush1.bf16.msra.mxu1 %v1513_v13  ;;  %v273_v12 = vld [vmem:[#allocation9 + $0x28] sm:$0xff] }
 0x134   :  { %1216 = vmatprep.subr.bf16.mxu0 %v1496_v14  ;;  %1257 = vmatprep.subr.bf16.mxu1 %v1498_v16  ;;  %v281_v13 = vld [vmem:[#allocation9 + $0x68] sm:$0xff]  ;;  %v1515_v14 = vcombine.low %v288_v2, %v296_v3  ;;  %v1517_v16 = vcombine.low %v289_v4, %v297_v5  ;;  %v290_v3 = vld [vmem:[#allocation9 + $0xb0] sm:$0xff]  ;;  %v291_v5 = vld [vmem:[#allocation9 + $0xb8] sm:$0xff] }
 0x135   :  { %v1502_v18 = vcombine.high %v273_v12, %v281_v13  ;;  %v298_v4 = vld [vmem:[#allocation9 + $0xf0] sm:$0xff] }
 0x137   :  { %1217 = vmatpush1.bf16.msra.mxu0 %v1495_v21  ;;  %1258 = vmatpush1.bf16.msra.mxu1 %v1497_v22  ;;  %v387_v21 = vld [vmem:[#allocation9 + $0x3b8] sm:$0xff] }
 0x138   :  { %1284 = vmatprep.subr.bf16.mxu0 %v1612_v23  ;;  %1325 = vmatprep.subr.bf16.mxu1 %v1614_v24  ;;  %v395_v22 = vld [vmem:[#allocation9 + $0x3f8] sm:$0xff]  ;;  %v1499_v23 = vcombine.low %v272_v10, %v280_v11  ;;  %v1501_v24 = vcombine.low %v273_v12, %v281_v13  ;;  %v274_v11 = vld [vmem:[#allocation9 + $0x30] sm:$0xff] }
 0x139   :  { %v1618_v26 = vcombine.high %v387_v21, %v395_v22  ;;  %v282_v12 = vld [vmem:[#allocation9 + $0x70] sm:$0xff]  ;;  %v275_v13 = vld [vmem:[#allocation9 + $0x38] sm:$0xff] }
 0x13a   :  { %1235 = vmatmul.mubr.bf16.vlgmr.msra.gmra.mxu0 %v1856_v29  ;;  %1276 = vmatmul.mubr.bf16.vlgmr.msra.gmra.mxu1 %v1856_v29 }
 0x13b   :  { %1285 = vmatpush1.bf16.msra.mxu0 %v1611_v30  ;;  %1326 = vmatpush1.bf16.msra.mxu1 %v1613_v31  ;;  %v371_v30 = vld [vmem:[#allocation9 + $0x338] sm:$0xff] }
 0x13c   :  { %1286 = vmatprep.subr.bf16.mxu0 %v1596_v32  ;;  %1327 = vmatprep.subr.bf16.mxu1 %v1598_v33  ;;  %v379_v31 = vld [vmem:[#allocation9 + $0x378] sm:$0xff]  ;;  %v1615_v32 = vcombine.low %v386_v19, %v394_v20  ;;  %v1617_v33 = vcombine.low %v387_v21, %v395_v22  ;;  %v1503_v20 = vcombine.low %v274_v11, %v282_v12  ;;  %v400_v22 = vlaneseq }
 0x13d   :  { %1316 = vmatprep.mubr.bf16.mxu0 %v1792_v15  ;;  %1357 = vmatprep.mubr.bf16.mxu1 %v1792_v15  ;;  %v1602_v35 = vcombine.high %v371_v30, %v379_v31 }
 0x13f   :  { %1287 = vmatpush1.bf16.msra.mxu0 %v1595_v38  ;;  %1328 = vmatpush1.bf16.msra.mxu1 %v1597_v39  ;;  %v355_v38 = vld [vmem:[#allocation9 + $0x2b8] sm:$0xff] }
 0x140   :  { %1288 = vmatprep.subr.bf16.mxu0 %v1580_v40  ;;  %1329 = vmatprep.subr.bf16.mxu1 %v1582_v41  ;;  %v363_v39 = vld [vmem:[#allocation9 + $0x2f8] sm:$0xff]  ;;  %v1599_v40 = vcombine.low %v370_v27, %v378_v28  ;;  %v1601_v41 = vcombine.low %v371_v30, %v379_v31 }
 0x141   :  { %v1586_v43 = vcombine.high %v355_v38, %v363_v39 }
 0x143   :  { %1289 = vmatpush1.bf16.msra.mxu0 %v1579_v46  ;;  %1330 = vmatpush1.bf16.msra.mxu1 %v1581_v47  ;;  %v339_v46 = vld [vmem:[#allocation9 + $0x238] sm:$0xff] }
 0x144   :  { %1290 = vmatprep.subr.bf16.mxu0 %v1564_v48  ;;  %1331 = vmatprep.subr.bf16.mxu1 %v1566_v49  ;;  %v347_v47 = vld [vmem:[#allocation9 + $0x278] sm:$0xff]  ;;  %v1583_v48 = vcombine.low %v354_v36, %v362_v37  ;;  %v1585_v49 = vcombine.low %v355_v38, %v363_v39 }
 0x145   :  { %v1570_v51 = vcombine.high %v339_v46, %v347_v47 }
 0x147   :  { %1291 = vmatpush1.bf16.msra.mxu0 %v1563_v54  ;;  %1332 = vmatpush1.bf16.msra.mxu1 %v1565_v55  ;;  %v323_v54 = vld [vmem:[#allocation9 + $0x1b8] sm:$0xff] }
 0x148   :  { %1292 = vmatprep.subr.bf16.mxu0 %v1548_v56  ;;  %1333 = vmatprep.subr.bf16.mxu1 %v1550_v57  ;;  %v331_v55 = vld [vmem:[#allocation9 + $0x1f8] sm:$0xff]  ;;  %v1567_v56 = vcombine.low %v338_v44, %v346_v45  ;;  %v1569_v57 = vcombine.low %v339_v46, %v347_v47 }
 0x14b   :  { %1293 = vmatpush1.bf16.msra.mxu0 %v1547_v62  ;;  %1334 = vmatpush1.bf16.msra.mxu1 %v1549_v63  ;;  %v315_v62 = vld [vmem:[#allocation9 + $0x178] sm:$0xff]  ;;  %v1551_v63 = vcombine.low %v322_v52, %v330_v53 }
 0x14c   :  { %1294 = vmatprep.subr.bf16.mxu0 %v1532_v0  ;;  %1335 = vmatprep.subr.bf16.mxu1 %v1534_v1  ;;  %v1553_v0 = vcombine.low %v323_v54, %v331_v55  ;;  %v1536_v1 = vcombine.high %v306_v59, %v314_v60  ;;  %v1538_v2 = vcombine.high %v307_v61, %v315_v62 }
 0x14f   :  { %1295 = vmatpush1.bf16.msra.mxu0 %v1531_v6  ;;  %1336 = vmatpush1.bf16.msra.mxu1 %v1533_v7  ;;  %v299_v6 = vld [vmem:[#allocation9 + $0xf8] sm:$0xff]  ;;  %v1535_v7 = vcombine.low %v306_v59, %v314_v60 }
 0x150   :  { %1296 = vmatprep.subr.bf16.mxu0 %v1516_v8  ;;  %1337 = vmatprep.subr.bf16.mxu1 %v1518_v9  ;;  %v1537_v8 = vcombine.low %v307_v61, %v315_v62  ;;  %v1520_v9 = vcombine.high %v290_v3, %v298_v4  ;;  %v1522_v10 = vcombine.high %v291_v5, %v299_v6 }
 0x153   :  { %1297 = vmatpush1.bf16.msra.mxu0 %v1515_v14  ;;  %1338 = vmatpush1.bf16.msra.mxu1 %v1517_v16  ;;  %v283_v14 = vld [vmem:[#allocation9 + $0x78] sm:$0xff]  ;;  %v1519_v16 = vcombine.low %v290_v3, %v298_v4 }
 0x154   :  { %1298 = vmatprep.subr.bf16.mxu0 %v1500_v17  ;;  %1339 = vmatprep.subr.bf16.mxu1 %v1502_v18  ;;  %v1521_v17 = vcombine.low %v291_v5, %v299_v6  ;;  %v1504_v18 = vcombine.high %v274_v11, %v282_v12  ;;  %v1506_v19 = vcombine.high %v275_v13, %v283_v14 }
 0x155   :  { %v1505_v21 = vcombine.low %v275_v13, %v283_v14 }
 0x157   :  { %1299 = vmatpush1.bf16.msra.mxu0 %v1499_v23  ;;  %1340 = vmatpush1.bf16.msra.mxu1 %v1501_v24  ;;  %v1872_v23 = vshrl.u32 %v400_v22, 7 }
 0x158   :  { %1366 = vmatprep.subr.bf16.mxu0 %v1616_v25  ;;  %1407 = vmatprep.subr.bf16.mxu1 %v1618_v26  ;;  %v396_v26 = vld [vmem:[#allocation10] sm:$0xff] }
 0x159   :  { %v402_v24 = vsub.s32 0, %v1872_v23  ;;  %v410_v25 = vsub.s32 2, %v1872_v23  ;;  %v406_v27 = vsub.s32 1, %v1872_v23  ;;  %v414_v28 = vsub.s32 3, %v1872_v23 }
 0x15a   :  { %1317 = vmatmul.mubr.bf16.vlgmr.msra.gmra.mxu0 %v1856_v29  ;;  %1358 = vmatmul.mubr.bf16.vlgmr.msra.gmra.mxu1 %v1856_v29  ;;  %v430_v52 = vsub.s32 7, %v1872_v23 }
 0x15b   :  { %1367 = vmatpush1.bf16.msra.mxu0 %v1615_v32  ;;  %1408 = vmatpush1.bf16.msra.mxu1 %v1617_v33  ;;  %v403_v30 = vrot.slane %v396_v26, %v402_v24  ;;  %v411_v31 = vrot.slane %v396_v26, %v410_v25  ;;  %v407_v32 = vrot.slane %v396_v26, %v406_v27 }
 0x15c   :  { %1368 = vmatprep.subr.bf16.mxu0 %v1600_v34  ;;  %1409 = vmatprep.subr.bf16.mxu1 %v1602_v35  ;;  %v415_v33 = vrot.slane %v396_v26, %v414_v28 }
 0x15d   :  { %1398 = vmatprep.mubr.bf16.mxu0 %v1792_v15  ;;  %1439 = vmatprep.mubr.bf16.mxu1 %v1792_v15  ;;  %v1554_v15 = vcombine.high %v323_v54, %v331_v55 }
 0x15f   :  { %1369 = vmatpush1.bf16.msra.mxu0 %v1599_v40  ;;  %1410 = vmatpush1.bf16.msra.mxu1 %v1601_v41 }
 0x160   :  { %1370 = vmatprep.subr.bf16.mxu0 %v1584_v42  ;;  %1411 = vmatprep.subr.bf16.mxu1 %v1586_v43 }
 0x163   :  { %1371 = vmatpush1.bf16.msra.mxu0 %v1583_v48  ;;  %1412 = vmatpush1.bf16.msra.mxu1 %v1585_v49  ;;  %v418_v49 = vsub.s32 4, %v1872_v23 }
 0x164   :  { %1372 = vmatprep.subr.bf16.mxu0 %v1568_v50  ;;  %1413 = vmatprep.subr.bf16.mxu1 %v1570_v51  ;;  %v426_v50 = vsub.s32 6, %v1872_v23  ;;  %v422_v51 = vsub.s32 5, %v1872_v23 }
 0x165   :  { %v419_v53 = vrot.slane %v396_v26, %v418_v49 }
 0x166   :  { %v427_v54 = vrot.slane %v396_v26, %v426_v50  ;;  %v423_v55 = vrot.slane %v396_v26, %v422_v51 }
 0x167   :  { %1373 = vmatpush1.bf16.msra.mxu0 %v1567_v56  ;;  %1414 = vmatpush1.bf16.msra.mxu1 %v1569_v57  ;;  %v431_v56 = vrot.slane %v396_v26, %v430_v52 }
 0x168   :  { %1374 = vmatprep.subr.bf16.mxu0 %v1552_v58  ;;  %1415 = vmatprep.subr.bf16.mxu1 %v1554_v15 }
 0x16b   :  { %1375 = vmatpush1.bf16.msra.mxu0 %v1551_v63  ;;  %1416 = vmatpush1.bf16.msra.mxu1 %v1553_v0 }
 0x16c   :  { %1376 = vmatprep.subr.bf16.mxu0 %v1536_v1  ;;  %1417 = vmatprep.subr.bf16.mxu1 %v1538_v2 }
 0x16f   :  { %1377 = vmatpush1.bf16.msra.mxu0 %v1535_v7  ;;  %1418 = vmatpush1.bf16.msra.mxu1 %v1537_v8  ;;  %v397_v8 = vld [vmem:[#allocation10 + $0x8] sm:$0xff] }
 0x170   :  { %1378 = vmatprep.subr.bf16.mxu0 %v1520_v9  ;;  %1419 = vmatprep.subr.bf16.mxu1 %v1522_v10  ;;  %v435_v9 = vrot.slane %v397_v8, %v402_v24  ;;  %v443_v10 = vrot.slane %v397_v8, %v410_v25  ;;  %v439_v11 = vrot.slane %v397_v8, %v406_v27 }
 0x171   :  { %v447_v12 = vrot.slane %v397_v8, %v414_v28 }
 0x173   :  { %1379 = vmatpush1.bf16.msra.mxu0 %v1519_v16  ;;  %1420 = vmatpush1.bf16.msra.mxu1 %v1521_v17 }
 0x174   :  { %1380 = vmatprep.subr.bf16.mxu0 %v1504_v18  ;;  %1421 = vmatprep.subr.bf16.mxu1 %v1506_v19 }
 0x177   :  { %1381 = vmatpush1.bf16.msra.mxu0 %v1503_v20  ;;  %1422 = vmatpush1.bf16.msra.mxu1 %v1505_v21 }
 0x17a   :  { %1399 = vmatmul.mubr.bf16.vlgmr.msra.gmra.mxu0 %v1856_v29  ;;  %1440 = vmatmul.mubr.bf16.vlgmr.msra.gmra.mxu1 %v1856_v29 }
 0x1da   :  { %v1154_v34 = vpop.f32.mrf.mxu0  ;;  %v1195_v35 = vpop.f32.mrf.mxu1 }
 0x1db   :  { %v1155_v36 = vadd.f32 %v1154_v34, %v403_v30  ;;  %v1196_v29 = vadd.f32 %v1195_v35, %v411_v31  ;;  %v451_v31 = vrot.slane %v397_v8, %v418_v49  ;;  %v463_v34 = vrot.slane %v397_v8, %v430_v52 }
 0x1dc   :  { %v1156_v37 = vpop.f32.mrf.mxu0  ;;  %v1197_v38 = vpop.f32.mrf.mxu1 }
 0x1dd   :  { %v1448_v39 = vmax.f32 %v1155_v36, 0.0  ;;  %v1450_v40 = vmax.f32 %v1196_v29, 0.0  ;;  %v1157_v41 = vadd.f32 %v1156_v37, %v407_v32  ;;  %v1198_v42 = vadd.f32 %v1197_v38, %v415_v33 }
 0x1de   :  { %v1158_v43 = vpop.f32.mrf.mxu0  ;;  %v1199_v44 = vpop.f32.mrf.mxu1  ;;  %v459_v32 = vrot.slane %v397_v8, %v426_v50  ;;  %v455_v33 = vrot.slane %v397_v8, %v422_v51 }
 0x1df   :  { %1464 = vst [vmem:[%s1937_s7] sm:$0xff] %v1448_v39  ;;  %1466 = vst [vmem:[%s1937_s7 + $0x10] sm:$0xff] %v1450_v40  ;;  %v1449_v45 = vmax.f32 %v1157_v41, 0.0  ;;  %v1451_v46 = vmax.f32 %v1198_v42, 0.0 }
 0x1e0   :  { %v1159_v47 = vpop.f32.mrf.mxu0  ;;  %v1200_v48 = vpop.f32.mrf.mxu1 }
 0x1e1   :  { %1465 = vst [vmem:[%s1937_s7 + $0x8] sm:$0xff] %v1449_v45  ;;  %1467 = vst [vmem:[%s1937_s7 + $0x18] sm:$0xff] %v1451_v46 }
 0x1fa   :  { %v1236_v57 = vpop.f32.mrf.mxu0  ;;  %v1277_v58 = vpop.f32.mrf.mxu1 }
 0x1fb   :  { %v1237_v15 = vadd.f32 %v1236_v57, %v419_v53  ;;  %v1278_v59 = vadd.f32 %v1277_v58, %v427_v54 }
 0x1fc   :  { %v1238_v60 = vpop.f32.mrf.mxu0  ;;  %v1279_v61 = vpop.f32.mrf.mxu1 }
 0x1fd   :  { %v1452_v62 = vmax.f32 %v1237_v15, 0.0  ;;  %v1454_v63 = vmax.f32 %v1278_v59, 0.0  ;;  %v1239_v0 = vadd.f32 %v1238_v60, %v423_v55  ;;  %v1280_v1 = vadd.f32 %v1279_v61, %v431_v56 }
 0x1fe   :  { %v1240_v2 = vpop.f32.mrf.mxu0  ;;  %v1281_v3 = vpop.f32.mrf.mxu1 }
 0x1ff   :  { %1468 = vst [vmem:[%s1937_s7 + $0x20] sm:$0xff] %v1452_v62  ;;  %1470 = vst [vmem:[%s1937_s7 + $0x30] sm:$0xff] %v1454_v63  ;;  %v1453_v4 = vmax.f32 %v1239_v0, 0.0  ;;  %v1455_v5 = vmax.f32 %v1280_v1, 0.0 }
 0x200   :  { %v1241_v6 = vpop.f32.mrf.mxu0  ;;  %v1282_v7 = vpop.f32.mrf.mxu1 }
 0x201   :  { %1469 = vst [vmem:[%s1937_s7 + $0x28] sm:$0xff] %v1453_v4  ;;  %1471 = vst [vmem:[%s1937_s7 + $0x38] sm:$0xff] %v1455_v5 }
 0x21a   :  { %v1318_v13 = vpop.f32.mrf.mxu0  ;;  %v1359_v14 = vpop.f32.mrf.mxu1 }
 0x21b   :  { %v1319_v16 = vadd.f32 %v1318_v13, %v435_v9  ;;  %v1360_v17 = vadd.f32 %v1359_v14, %v443_v10 }
 0x21c   :  { %v1320_v18 = vpop.f32.mrf.mxu0  ;;  %v1361_v19 = vpop.f32.mrf.mxu1 }
 0x21d   :  { %v1456_v20 = vmax.f32 %v1319_v16, 0.0  ;;  %v1458_v21 = vmax.f32 %v1360_v17, 0.0  ;;  %v1321_v22 = vadd.f32 %v1320_v18, %v439_v11  ;;  %v1362_v23 = vadd.f32 %v1361_v19, %v447_v12 }
 0x21e   :  { %v1322_v26 = vpop.f32.mrf.mxu0  ;;  %v1363_v30 = vpop.f32.mrf.mxu1 }
 0x21f   :  { %1472 = vst [vmem:[%s1937_s7 + $0x40] sm:$0xff] %v1456_v20  ;;  %1474 = vst [vmem:[%s1937_s7 + $0x50] sm:$0xff] %v1458_v21  ;;  %v1457_v24 = vmax.f32 %v1321_v22, 0.0  ;;  %v1459_v25 = vmax.f32 %v1362_v23, 0.0 }
 0x220   :  { %v1323_v27 = vpop.f32.mrf.mxu0  ;;  %v1364_v28 = vpop.f32.mrf.mxu1 }
 0x221   :  { %1473 = vst [vmem:[%s1937_s7 + $0x48] sm:$0xff] %v1457_v24  ;;  %1475 = vst [vmem:[%s1937_s7 + $0x58] sm:$0xff] %v1459_v25 }
 0x23a   :  { %v1400_v35 = vpop.f32.mrf.mxu0  ;;  %v1441_v36 = vpop.f32.mrf.mxu1 }
 0x23b   :  { %v1401_v29 = vadd.f32 %v1400_v35, %v451_v31  ;;  %v1442_v37 = vadd.f32 %v1441_v36, %v459_v32 }
 0x23c   :  { %v1402_v38 = vpop.f32.mrf.mxu0  ;;  %v1443_v39 = vpop.f32.mrf.mxu1 }
 0x23d   :  { %v1460_v40 = vmax.f32 %v1401_v29, 0.0  ;;  %v1462_v41 = vmax.f32 %v1442_v37, 0.0  ;;  %v1403_v42 = vadd.f32 %v1402_v38, %v455_v33  ;;  %v1444_v43 = vadd.f32 %v1443_v39, %v463_v34 }
 0x23e   :  { %v1404_v44 = vpop.f32.mrf.mxu0  ;;  %v1445_v45 = vpop.f32.mrf.mxu1 }
 0x23f   :  { %1476 = vst [vmem:[%s1937_s7 + $0x60] sm:$0xff] %v1460_v40  ;;  %1478 = vst [vmem:[%s1937_s7 + $0x70] sm:$0xff] %v1462_v41  ;;  %v1461_v46 = vmax.f32 %v1403_v42, 0.0  ;;  %v1463_v47 = vmax.f32 %v1444_v43, 0.0 }
 0x240   :  { %v1405_v48 = vpop.f32.mrf.mxu0  ;;  %v1446_v49 = vpop.f32.mrf.mxu1 }
 0x241   :  { %1477 = vst [vmem:[%s1937_s7 + $0x68] sm:$0xff] %v1461_v46  ;;  %1479 = vst [vmem:[%s1937_s7 + $0x78] sm:$0xff] %v1463_v47 }
 0x242   :  { %1484 = vsyncpa [#allocation3], 1 }
 0x243   :  { %1485 = vsyncpa [#allocation5], 1 }
 0x244   :  { %1486 = vsyncpa [#allocation8], 1 }
 0x245   :  { %1487 = vsyncpa [#allocation11], 1 }

</bundles_post_ra>
